<compile_context>
chip_gen: v7x
topology: tpu7x:2x2x1
jax: 0.10.0
libtpu: 0.0.40
codegen_flags: <defaults>
</compile_context>

<pallas_src>
import functools

import jax
import jax.numpy as jnp
import numpy as np
from jax import lax
from jax.experimental import pallas as pl
from jax.experimental.pallas import tpu as pltpu

_LANES = 128
_VMEM = pltpu.MemorySpace.VMEM
_SMEM = pltpu.MemorySpace.SMEM


@functools.lru_cache(maxsize=1)
def _vmem_capacity_bytes():
    try:
        return int(pltpu.get_tpu_info().vmem_capacity_bytes)
    except Exception:
        return 64 * 1024 * 1024          # conservative default (v7x per-core)


def _ceil_div(a, b):
    return -(-a // b)


def _pick_tile_rows(n_rows, width):
    """~2 MiB x-blocks (review: ~1-2 MiB is the HBM-roofline sweet spot)."""
    target_bytes = 2 << 20
    rows = (target_bytes // (4 * width)) // 8 * 8
    rows = max(8, min(rows, 1 << 15))
    if n_rows <= rows:
        return n_rows                    # one full block (always layout-legal)
    return rows


# --------------------------------------------------------------------------
# Fused single-read path: reduce + merge stats + normalize, x resident in
# VMEM, executed once (no grid).
# --------------------------------------------------------------------------
def _fused_kernel(acc_sum_ref, acc_sq_ref, scal_ref, x_ref,
                  o_ref, nsum_ref, nsq_ref, *, std_epsilon, pack, d):
    x = x_ref[...].astype(jnp.float32)                        # [R, W]
    psum = jnp.sum(x, axis=0, keepdims=True)                  # [1, W]
    psq = jnp.sum(x * x, axis=0, keepdims=True)

    # Fold the lane-pack groups so every lane holds its feature's total
    # (lane j corresponds to feature j % d).  XLU rolls are ~free here.
    fsum, fsq = psum, psq
    for k in range(1, pack):
        fsum = fsum + pltpu.roll(psum, shift=k * d, axis=1)
        fsq = fsq + pltpu.roll(psq, shift=k * d, axis=1)

    gate = (scal_ref[2] > 0.5).astype(jnp.float32)            # do_acc flag
    new_sum = acc_sum_ref[...] + gate * fsum
    new_sq = acc_sq_ref[...] + gate * fsq
    new_count = scal_ref[0] + gate * scal_ref[1]
    nsum_ref[...] = new_sum
    nsq_ref[...] = new_sq

    safe = jnp.maximum(new_count, jnp.float32(1.0))
    inv_count = jnp.float32(1.0) / safe
    mean = new_sum * inv_count
    var = jnp.maximum(new_sq * inv_count - mean * mean, jnp.float32(0.0))
    std = jnp.maximum(jnp.sqrt(var), jnp.float32(std_epsilon))
    inv_std = jnp.float32(1.0) / std
    o_ref[...] = (x - mean) * inv_std


def _fused_call(x_view, acc_sum_t, acc_sq_t, scalars, *, std_epsilon, pack, d,
                vmem_limit):
    n_rows, width = x_view.shape
    kern = functools.partial(_fused_kernel, std_epsilon=float(std_epsilon),
                             pack=pack, d=d)
    return pl.pallas_call(
        kern,
        out_shape=(jax.ShapeDtypeStruct((n_rows, width), jnp.float32),
                   jax.ShapeDtypeStruct((1, width), jnp.float32),
                   jax.ShapeDtypeStruct((1, width), jnp.float32)),
        in_specs=[pl.BlockSpec(memory_space=_VMEM),
                  pl.BlockSpec(memory_space=_VMEM),
                  pl.BlockSpec(memory_space=_SMEM),
                  pl.BlockSpec(memory_space=_VMEM)],
        out_specs=(pl.BlockSpec(memory_space=_VMEM),
                   pl.BlockSpec(memory_space=_VMEM),
                   pl.BlockSpec(memory_space=_VMEM)),
        compiler_params=pltpu.CompilerParams(vmem_limit_bytes=vmem_limit),
    )(acc_sum_t, acc_sq_t, scalars, x_view)


# --------------------------------------------------------------------------
# Pass 1 (streaming path): batch-axis sum / sum-of-squares, split across a
# leading size-2 "parallel" grid axis (both TensorCores on v7x).
# --------------------------------------------------------------------------
def _reduce_kernel(x_ref, sum_ref, sq_ref, *, tile_rows, tiles_per_core,
                   n_rows):
    c = pl.program_id(0)
    i = pl.program_id(1)

    @pl.when(i == 0)
    def _():
        sum_ref[...] = jnp.zeros_like(sum_ref)
        sq_ref[...] = jnp.zeros_like(sq_ref)

    start = (c * tiles_per_core + i) * tile_rows               # unclamped
    rows = lax.broadcasted_iota(jnp.int32, x_ref.shape, 0)
    valid = rows < (n_rows - start)                            # tail / dup mask
    x = jnp.where(valid, x_ref[...].astype(jnp.float32), jnp.float32(0.0))
    w = x.shape[1]
    sum_ref[...] += jnp.sum(x, axis=0, keepdims=True).reshape(1, 1, w)
    sq_ref[...] += jnp.sum(x * x, axis=0, keepdims=True).reshape(1, 1, w)


def _batch_sums(x_view, n_rows, width, vmem_limit):
    tile_rows = _pick_tile_rows(n_rows, width)
    num_tiles = _ceil_div(n_rows, tile_rows)
    tiles_per_core = _ceil_div(num_tiles, 2)
    kern = functools.partial(_reduce_kernel, tile_rows=tile_rows,
                             tiles_per_core=tiles_per_core, n_rows=n_rows)

    def x_map(c, i):
        return (jnp.minimum(c * tiles_per_core + i, num_tiles - 1), 0)

    return pl.pallas_call(
        kern,
        out_shape=(jax.ShapeDtypeStruct((2, 1, width), jnp.float32),
                   jax.ShapeDtypeStruct((2, 1, width), jnp.float32)),
        grid=(2, tiles_per_core),
        in_specs=[pl.BlockSpec((tile_rows, width), x_map)],
        out_specs=(pl.BlockSpec((1, 1, width), lambda c, i: (c, 0, 0)),
                   pl.BlockSpec((1, 1, width), lambda c, i: (c, 0, 0))),
        compiler_params=pltpu.CompilerParams(
            dimension_semantics=("parallel", "arbitrary"),
            vmem_limit_bytes=vmem_limit),
    )(x_view)


# --------------------------------------------------------------------------
# Pass 2 (streaming path): o = (x - mean) * inv_std with precomputed stats.
# --------------------------------------------------------------------------
def _normalize_kernel(mean_ref, inv_ref, x_ref, o_ref):
    x = x_ref[...].astype(jnp.float32)
    o_ref[...] = (x - mean_ref[...]) * inv_ref[...]


def _normalize(x_view, mean_t, inv_t, vmem_limit):
    n_rows, width = x_view.shape
    tile_rows = _pick_tile_rows(n_rows, width)
    num_tiles = _ceil_div(n_rows, tile_rows)
    return pl.pallas_call(
        _normalize_kernel,
        out_shape=jax.ShapeDtypeStruct((n_rows, width), jnp.float32),
        grid=(num_tiles,),
        in_specs=[pl.BlockSpec((1, width), lambda i: (0, 0)),
                  pl.BlockSpec((1, width), lambda i: (0, 0)),
                  pl.BlockSpec((tile_rows, width), lambda i: (i, 0))],
        out_specs=pl.BlockSpec((tile_rows, width), lambda i: (i, 0)),
        compiler_params=pltpu.CompilerParams(
            dimension_semantics=("parallel",),
            vmem_limit_bytes=vmem_limit),
    )(mean_t, inv_t, x_view)


# --------------------------------------------------------------------------
# Wrapper: functional equivalent of Normalizer.forward.
# --------------------------------------------------------------------------
def normalizer_forward(batched_data, acc_sum, acc_sum_squared, acc_count,
                       num_accumulations, *, max_accumulations=10 ** 6,
                       std_epsilon=1e-8, accumulate=True,
                       force_two_pass=False):
    """Returns (normalized, new_acc_sum, new_acc_sum_squared, new_acc_count,
    new_num_accumulations)."""
    x = batched_data
    n, d = x.shape

    # Lane-dense view (pure reshape, no pad copies): [n, d] -> [n/pack, 128].
    if d % _LANES == 0:
        pack, width = 1, d
    elif _LANES % d == 0 and n % (_LANES // d) == 0:
        pack, width = _LANES // d, _LANES
    else:
        pack, width = 1, d
    n_rows = n // pack
    x_view = x.reshape(n_rows, width) if pack > 1 else x

    vmem_cap = _vmem_capacity_bytes()
    vmem_limit = int(0.8 * vmem_cap)

    acc_sum = acc_sum.astype(jnp.float32)
    acc_sum_squared = acc_sum_squared.astype(jnp.float32)
    acc_count = acc_count.astype(jnp.float32)
    num_accumulations = num_accumulations.astype(jnp.float32)

    do_acc = (num_accumulations[0] < jnp.float32(max_accumulations)
              if accumulate else None)

    x_bytes = n_rows * width * x_view.dtype.itemsize
    out_bytes = n_rows * width * 4
    fused_ok = (accumulate and not force_two_pass
                and (x_bytes + out_bytes + (1 << 20)) <= int(0.45 * vmem_cap))

    if fused_ok:
        # ---- single-HBM-read fused path -----------------------------------
        acc_sum_t = jnp.tile(acc_sum, (1, pack)) if pack > 1 else acc_sum
        acc_sq_t = (jnp.tile(acc_sum_squared, (1, pack)) if pack > 1
                    else acc_sum_squared)
        scalars = jnp.stack([acc_count[0], jnp.float32(n),
                             do_acc.astype(jnp.float32)])
        out_p, nsum_t, nsq_t = _fused_call(
            x_view, acc_sum_t, acc_sq_t, scalars,
            std_epsilon=std_epsilon, pack=pack, d=d, vmem_limit=vmem_limit)
        new_sum = nsum_t[:, :d]
        new_sq = nsq_t[:, :d]
        new_count = jnp.where(do_acc, acc_count + jnp.float32(n), acc_count)
        new_num = jnp.where(do_acc, num_accumulations + 1.0,
                            num_accumulations)
        out = out_p.reshape(n, d) if pack > 1 else out_p
        return out, new_sum, new_sq, new_count, new_num

    # ---- two-pass streaming path ------------------------------------------
    if accumulate:
        def _run_sums():
            return _batch_sums(x_view, n_rows, width, vmem_limit)

        def _skip_sums():
            z = jnp.zeros((2, 1, width), jnp.float32)
            return z, z

        # Skip the whole HBM read of x for the reduction once saturated.
        psum, psq = lax.cond(do_acc, _run_sums, _skip_sums)
        tot_sum = psum.sum(axis=0)                             # [1, W]
        tot_sq = psq.sum(axis=0)
        if pack > 1:
            data_sum = tot_sum.reshape(pack, d).sum(axis=0, keepdims=True)
            data_sq = tot_sq.reshape(pack, d).sum(axis=0, keepdims=True)
        else:
            data_sum, data_sq = tot_sum, tot_sq
        new_sum = jnp.where(do_acc, acc_sum + data_sum, acc_sum)
        new_sq = jnp.where(do_acc, acc_sum_squared + data_sq, acc_sum_squared)
        new_count = jnp.where(do_acc, acc_count + jnp.float32(n), acc_count)
        new_num = jnp.where(do_acc, num_accumulations + 1.0,
                            num_accumulations)
    else:
        new_sum, new_sq = acc_sum, acc_sum_squared
        new_count, new_num = acc_count, num_accumulations

    # Hoisted statistics math (tiny [1, d] op) so the streaming kernel body
    # is a pure (x - mean) * inv_std.
    safe = jnp.maximum(new_count[0], jnp.float32(1.0))
    mean = new_sum / safe
    var = jnp.maximum(new_sq / safe - mean * mean, jnp.float32(0.0))
    std = jnp.maximum(jnp.sqrt(var), jnp.float32(std_epsilon))
    inv_std = 1.0 / std
    mean_t = jnp.tile(mean, (1, pack)) if pack > 1 else mean
    inv_t = jnp.tile(inv_std, (1, pack)) if pack > 1 else inv_std

    out_p = _normalize(x_view, mean_t, inv_t, vmem_limit)
    out = out_p.reshape(n, d) if pack > 1 else out_p
    return out, new_sum, new_sq, new_count, new_num


# --------------------------------------------------------------------------
# Pure-numpy (float64) reference.
# --------------------------------------------------------------------------
def _reference_forward(x, acc_sum, acc_sq, count, num_acc,
                       max_accumulations=10 ** 6, std_epsilon=1e-8,
                       accumulate=True):
    x = np.asarray(x, np.float64)
    acc_sum = np.asarray(acc_sum, np.float64).copy()
    acc_sq = np.asarray(acc_sq, np.float64).copy()
    count = float(np.asarray(count).reshape(-1)[0])
    num_acc = float(np.asarray(num_acc).reshape(-1)[0])
    if accumulate and num_acc < max_accumulations:
        acc_sum = acc_sum + x.sum(axis=0, keepdims=True)
        acc_sq = acc_sq + (x ** 2).sum(axis=0, keepdims=True)
        count += x.shape[0]
        num_acc += 1.0
    safe = max(count, 1.0)
    mean = acc_sum / safe
    var = np.maximum(acc_sq / safe - mean ** 2, 0.0)
    std = np.maximum(np.sqrt(var), std_epsilon)
    return (x - mean) / std, acc_sum, acc_sq, count, num_acc


def _check(got, ref, tol):
    norm, s, q, c, m = got
    rnorm, rs, rq, rc, rm = ref
    np.testing.assert_allclose(np.asarray(norm), rnorm, rtol=tol, atol=tol)
    np.testing.assert_allclose(np.asarray(s), rs, rtol=tol, atol=tol)
    np.testing.assert_allclose(np.asarray(q), rq, rtol=tol, atol=tol)
    assert abs(float(np.asarray(c).reshape(-1)[0]) - rc) < 0.5
    assert abs(float(np.asarray(m).reshape(-1)[0]) - rm) < 0.5


if __name__ == "__main__":
    D = 32                                   # Normalizer(size=32)
    MAX_ACC = 10 ** 6
    EPS = 1e-8

    fwd = jax.jit(normalizer_forward,
                  static_argnames=("max_accumulations", "std_epsilon",
                                   "accumulate", "force_two_pass"))

    def zero_state():
        return (jnp.zeros((1, D), jnp.float32),
                jnp.zeros((1, D), jnp.float32),
                jnp.zeros((1,), jnp.float32),
                jnp.zeros((1,), jnp.float32))

    key = jax.random.PRNGKey(0)
    k1, k2, k3 = jax.random.split(key, 3)

    # --- Test 1: small batch -> fused VMEM-resident path (packed 32->128) --
    N1 = 8
    x1 = jax.random.normal(k1, (N1, D), jnp.float32) * 3.0 + 1.5
    s0, q0, c0, m0 = zero_state()
    o1 = jax.block_until_ready(fwd(x1, s0, q0, c0, m0,
                                   max_accumulations=MAX_ACC, std_epsilon=EPS,
                                   accumulate=True))
    r1 = _reference_forward(x1, s0, q0, c0, m0, MAX_ACC, EPS, True)
    _check(o1, r1, 5e-5)

    # chained second accumulation on the updated state
    x1b = x1 * 0.5 - 1.0
    o1b = jax.block_until_ready(fwd(x1b, o1[1], o1[2], o1[3], o1[4],
                                    max_accumulations=MAX_ACC,
                                    std_epsilon=EPS, accumulate=True))
    r1b = _reference_forward(x1b, r1[1], r1[2], r1[3], r1[4],
                             MAX_ACC, EPS, True)
    _check(o1b, r1b, 5e-5)

    # inference path: accumulate=False (no reduction pass emitted)
    o1c = jax.block_until_ready(fwd(x1, o1b[1], o1b[2], o1b[3], o1b[4],
                                    max_accumulations=MAX_ACC,
                                    std_epsilon=EPS, accumulate=False))
    r1c = _reference_forward(x1, r1b[1], r1b[2], r1b[3], r1b[4],
                             MAX_ACC, EPS, False)
    _check(o1c, r1c, 5e-5)

    # --- Test 2: larger batch forced through the two-pass streaming path ---
    N2 = 33000
    x2 = jax.random.normal(k2, (N2, D), jnp.float32) * 2.0 - 0.5
    s0, q0, c0, m0 = zero_state()
    o2 = jax.block_until_ready(fwd(x2, s0, q0, c0, m0,
                                   max_accumulations=MAX_ACC, std_epsilon=EPS,
                                   accumulate=True, force_two_pass=True))
    r2 = _reference_forward(x2, s0, q0, c0, m0, MAX_ACC, EPS, True)
    _check(o2, r2, 2e-4)

    # --- Test 3: batch not divisible by the lane pack (width = D fallback) -
    N3 = 7
    x3 = jax.random.normal(k3, (N3, D), jnp.float32) + 2.0
    s0, q0, c0, m0 = zero_state()
    o3 = jax.block_until_ready(fwd(x3, s0, q0, c0, m0,
                                   max_accumulations=MAX_ACC, std_epsilon=EPS,
                                   accumulate=True))
    r3 = _reference_forward(x3, s0, q0, c0, m0, MAX_ACC, EPS, True)
    _check(o3, r3, 5e-5)

    print("KERNEL_OK")
</pallas_src>

<mosaic_0001>
module attributes {stable_mosaic.version = 11 : i64} {
  func.func @_fused_kernel(%arg0: memref<1x128xf32, #tpu.memory_space<vmem>>, %arg1: memref<1x128xf32, #tpu.memory_space<vmem>>, %arg2: memref<3xf32, #tpu.memory_space<smem>>, %arg3: memref<2x128xf32, #tpu.memory_space<vmem>>, %arg4: memref<2x128xf32, #tpu.memory_space<vmem>>, %arg5: memref<1x128xf32, #tpu.memory_space<vmem>>, %arg6: memref<1x128xf32, #tpu.memory_space<vmem>>) attributes {dimension_semantics = [], scalar_prefetch = 0 : i64, scratch_operands = 0 : i64, tpu.core_type = #tpu.core_type<tc>} {
    %c0 = arith.constant 0 : index
    %c0_0 = arith.constant 0 : index
    %0 = vector.load %arg3[%c0, %c0_0] : memref<2x128xf32, #tpu.memory_space<vmem>>, vector<2x128xf32>
    %cst = arith.constant dense<0.000000e+00> : vector<128xf32>
    %1 = vector.multi_reduction <add>, %0, %cst [0] : vector<2x128xf32> to vector<128xf32>
    %2 = vector.shape_cast %1 : vector<128xf32> to vector<1x128xf32>
    %3 = arith.mulf %0, %0 : vector<2x128xf32>
    %cst_1 = arith.constant dense<0.000000e+00> : vector<128xf32>
    %4 = vector.multi_reduction <add>, %3, %cst_1 [0] : vector<2x128xf32> to vector<128xf32>
    %5 = vector.shape_cast %4 : vector<128xf32> to vector<1x128xf32>
    %c32_i32 = arith.constant 32 : i32
    %6 = tpu.dynamic_rotate %2 by %c32_i32 dim 1 : vector<1x128xf32>, i32 -> vector<1x128xf32>
    %7 = arith.addf %2, %6 : vector<1x128xf32>
    %c32_i32_2 = arith.constant 32 : i32
    %8 = tpu.dynamic_rotate %5 by %c32_i32_2 dim 1 : vector<1x128xf32>, i32 -> vector<1x128xf32>
    %9 = arith.addf %5, %8 : vector<1x128xf32>
    %c64_i32 = arith.constant 64 : i32
    %10 = tpu.dynamic_rotate %2 by %c64_i32 dim 1 : vector<1x128xf32>, i32 -> vector<1x128xf32>
    %11 = arith.addf %7, %10 : vector<1x128xf32>
    %c64_i32_3 = arith.constant 64 : i32
    %12 = tpu.dynamic_rotate %5 by %c64_i32_3 dim 1 : vector<1x128xf32>, i32 -> vector<1x128xf32>
    %13 = arith.addf %9, %12 : vector<1x128xf32>
    %c96_i32 = arith.constant 96 : i32
    %14 = tpu.dynamic_rotate %2 by %c96_i32 dim 1 : vector<1x128xf32>, i32 -> vector<1x128xf32>
    %15 = arith.addf %11, %14 : vector<1x128xf32>
    %c96_i32_4 = arith.constant 96 : i32
    %16 = tpu.dynamic_rotate %5 by %c96_i32_4 dim 1 : vector<1x128xf32>, i32 -> vector<1x128xf32>
    %17 = arith.addf %13, %16 : vector<1x128xf32>
    %c2 = arith.constant 2 : index
    %18 = memref.load %arg2[%c2] : memref<3xf32, #tpu.memory_space<smem>>
    %cst_5 = arith.constant 5.000000e-01 : f32
    %19 = arith.cmpf ogt, %18, %cst_5 : f32
    %20 = arith.extui %19 : i1 to i32
    %21 = arith.sitofp %20 : i32 to f32
    %c0_6 = arith.constant 0 : index
    %c0_7 = arith.constant 0 : index
    %22 = vector.load %arg0[%c0_6, %c0_7] : memref<1x128xf32, #tpu.memory_space<vmem>>, vector<1x128xf32>
    %23 = vector.broadcast %21 : f32 to vector<1x128xf32>
    %24 = arith.mulf %23, %15 : vector<1x128xf32>
    %25 = arith.addf %22, %24 : vector<1x128xf32>
    %c0_8 = arith.constant 0 : index
    %c0_9 = arith.constant 0 : index
    %26 = vector.load %arg1[%c0_8, %c0_9] : memref<1x128xf32, #tpu.memory_space<vmem>>, vector<1x128xf32>
    %27 = vector.broadcast %21 : f32 to vector<1x128xf32>
    %28 = arith.mulf %27, %17 : vector<1x128xf32>
    %29 = arith.addf %26, %28 : vector<1x128xf32>
    %c0_10 = arith.constant 0 : index
    %30 = memref.load %arg2[%c0_10] : memref<3xf32, #tpu.memory_space<smem>>
    %c1 = arith.constant 1 : index
    %31 = memref.load %arg2[%c1] : memref<3xf32, #tpu.memory_space<smem>>
    %32 = arith.mulf %21, %31 : f32
    %33 = arith.addf %30, %32 : f32
    %c0_11 = arith.constant 0 : index
    %c0_12 = arith.constant 0 : index
    %34 = vector.load %arg5[%c0_11, %c0_12] : memref<1x128xf32, #tpu.memory_space<vmem>>, vector<1x128xf32>
    tpu.vector_store %arg5[%c0_11, %c0_12], %25 {strides = array<i32>} : memref<1x128xf32, #tpu.memory_space<vmem>>, vector<1x128xf32>,
    %c0_13 = arith.constant 0 : index
    %c0_14 = arith.constant 0 : index
    %35 = vector.load %arg6[%c0_13, %c0_14] : memref<1x128xf32, #tpu.memory_space<vmem>>, vector<1x128xf32>
    tpu.vector_store %arg6[%c0_13, %c0_14], %29 {strides = array<i32>} : memref<1x128xf32, #tpu.memory_space<vmem>>, vector<1x128xf32>,
    %cst_15 = arith.constant 1.000000e+00 : f32
    %36 = arith.maximumf %33, %cst_15 : f32
    %cst_16 = arith.constant 1.000000e+00 : f32
    %37 = arith.divf %cst_16, %36 : f32
    %38 = vector.broadcast %37 : f32 to vector<1x128xf32>
    %39 = arith.mulf %25, %38 : vector<1x128xf32>
    %40 = vector.broadcast %37 : f32 to vector<1x128xf32>
    %41 = arith.mulf %29, %40 : vector<1x128xf32>
    %42 = arith.mulf %39, %39 : vector<1x128xf32>
    %43 = arith.subf %41, %42 : vector<1x128xf32>
    %cst_17 = arith.constant 0.000000e+00 : f32
    %44 = vector.broadcast %cst_17 : f32 to vector<1x128xf32>
    %45 = arith.maximumf %43, %44 : vector<1x128xf32>
    %46 = math.sqrt %45 : vector<1x128xf32>
    %cst_18 = arith.constant 9.99999993E-9 : f32
    %47 = vector.broadcast %cst_18 : f32 to vector<1x128xf32>
    %48 = arith.maximumf %46, %47 : vector<1x128xf32>
    %cst_19 = arith.constant 1.000000e+00 : f32
    %49 = vector.broadcast %cst_19 : f32 to vector<1x128xf32>
    %50 = arith.divf %49, %48 : vector<1x128xf32>
    %51 = vector.broadcast %39 : vector<1x128xf32> to vector<2x128xf32>
    %52 = arith.subf %0, %51 : vector<2x128xf32>
    %53 = vector.broadcast %50 : vector<1x128xf32> to vector<2x128xf32>
    %54 = arith.mulf %52, %53 : vector<2x128xf32>
    %c0_20 = arith.constant 0 : index
    %c0_21 = arith.constant 0 : index
    %55 = vector.load %arg4[%c0_20, %c0_21] : memref<2x128xf32, #tpu.memory_space<vmem>>, vector<2x128xf32>
    tpu.vector_store %arg4[%c0_20, %c0_21], %54 {strides = array<i32>} : memref<2x128xf32, #tpu.memory_space<vmem>>, vector<2x128xf32>,
    return
  }
}

</mosaic_0001>

<bundles_post_ra>
// kernel: normalizer_forward.1
= control target key start
LH: loop header
LB: loop body
LE: loop exit
PB: predicated region body
PF: predicated region fallthrough
CT: control target
= control target key end

     0   :  { %12 = vsyncpa [#allocation4], 0  ;;  %s335_s0 = inlined_call_operand.vmem [shape: f32[1,128], index: 0, kind: input, shape index: {}]   ;;  %s336_s1 = inlined_call_operand.vmem [shape: f32[1,128], index: 1, kind: input, shape index: {}]   ;;  %s337_s2 = inlined_call_operand.vmem [shape: f32[3], index: 2, kind: input, shape index: {}]   ;;  %s338_s3 = inlined_call_operand.vmem [shape: f32[2,128], index: 3, kind: input, shape index: {}]   ;;  %s339_s4 = inlined_call_operand.vmem [shape: f32[2,128], index: 4, kind: output, shape index: {0}]   ;;  %s340_s5 = inlined_call_operand.hbm [shape: f32[1,128], index: 5, kind: output, shape index: {1}]   ;;  %s341_s6 = inlined_call_operand.hbm [shape: f32[1,128], index: 6, kind: output, shape index: {2}]  }
   0x1   :  { %13 = vsyncpa [#allocation3], 0 }
   0x2   :  { %14 = vsyncpa [#allocation7], 0  ;;  %s25_s23 = sshll.u32 %s337_s2, 4  ;;  %s26_s23 = int_to_ptr.vmem [resolvable:$true] %s25_s23 }
   0x3   :  { %s172_s24 = scalar_lea.vmem %s26_s23, 16  ;;  %p177_p1 = scmp.lt.s32.totalorder %s26_s23, %s26_s23 }
   0x4   :  { %p173_p0 = scmp.ne.s32.totalorder %s26_s23, %s172_s24  ;;  %p178_p2 = scmp.lt.s32.totalorder %s172_s24, %s172_s24 }
   0x6   :  { %p179_p3 = por %p178_p2, %p177_p1 }
   0x8   :  { %p180_p4 = pnand %p179_p3, %p173_p0 }
   0xa   :  { %183 = shalt.err (!%p180_p4)
}
   0xb   :  { %s234_s25 = smov [#allocation2]  }
   0xc   :  { %28 = dma.vmem_to_smem %s26_s23, 16, %s234_s25, [#allocation4]  }
   0xd   :  { %228 = dma.done.wait [#allocation4], 16  }
   0xe   :  { %229 = vsyncadd [#allocation4], 4294967280 }
   0xf   :  { %34 = sfence }
  0x10   :  { %v282_v0 = vld [vmem:[%s338_s3] sm:$0x3]  ;;  %vm36_vm0 = vcmask 1041408   ;;  %s155_s2 = sld [smem:[#allocation2 + $0x2]]  ;;  %s156_s28 = sld [smem:[#allocation2 + $0x1]] }
  0x11   :  { %v37_v1 = vsel %vm36_vm0, %v282_v0, 0.0  ;;  %v44_v2 = vmul.f32 %v282_v0, %v282_v0  ;;  %s81_s29 = sld [smem:[#allocation2]]  ;;  %s235_s8 = smov 64   ;;  %v74_v31 = vld [vmem:[%s335_s0] sm:$0x1] }
  0x12   :  { %v38_v3 = vrot.slane %v37_v1, 4  ;;  %s236_s9 = smov 32   ;;  %s237_s11 = smov 1.0   ;;  %v78_v32 = vld [vmem:[%s336_s1] sm:$0x1] }
  0x13   :  { %v45_v4 = vsel %vm36_vm0, %v44_v2, 0.0  ;;  %s238_s13 = smov 96   ;;  %s239_s19 = smov [#allocation5]  }
  0x14   :  { %v39_v5 = vadd.f32 %v38_v3, %v37_v1  ;;  %v46_v6 = vrot.slane %v45_v4, 4  ;;  %s130_s20 = sshll.u32 %s239_s19, 4  ;;  %s240_s21 = smov [#allocation6]   ;;  %s131_s20 = int_to_ptr.vmem [resolvable:$true] %s130_s20 }
  0x15   :  { %s140_s22 = sshll.u32 %s240_s21, 4  ;;  %s184_s0 = scalar_lea.vmem %s131_s20, 16  ;;  %s299_s22 = int_to_ptr.vmem [resolvable:$true] %s140_s22 }
  0x16   :  { %v40_v7 = vrot.slane %v39_v5, 2  ;;  %v47_v8 = vadd.f32 %v46_v6, %v45_v4  ;;  %p71_p5 = scmp.gt.f32.partialorder %s155_s2, 0.5  ;;  %p185_p6 = scmp.ne.s32.totalorder %s131_s20, %s184_s0 }
  0x17   :  { %s188_s23 = scalar_lea.vmem %s131_s20, 32  ;;  %p189_p7 = scmp.lt.s32.totalorder %s131_s20, %s131_s20 }
  0x18   :  { %v41_v9 = vadd.f32 %v40_v7, %v39_v5  ;;  %v48_v10 = vrot.slane %v47_v8, 2  ;;  %s287_s3 = scalar_select %p71_p5, 1, 0 }
  0x19   :  { %p190_p8 = scmp.lt.s32.totalorder %s188_s23, %s184_s0 }
  0x1a   :  { %v42_v11 = vrot.slane %v41_v9, 1  ;;  %v49_v12 = vadd.f32 %v48_v10, %v47_v8  ;;  %s73_s30 = scvt.s32.f32 %s287_s3 }
  0x1b   :  { %p191_p9 = por %p190_p8, %p189_p7 }
  0x1c   :  { %v43_v13 = vadd.f32 %v42_v11, %v41_v9  ;;  %v50_v14 = vrot.slane %v49_v12, 1  ;;  %s83_s7 = smul.f32 %s156_s28, %s73_s30  ;;  %v75_v26 = vstv %s73_s30 }
  0x1d   :  { %p192_p10 = pnand %p191_p9, %p185_p6 }
  0x1e   :  { %58 = vrot.lane.b32.xlu1 %v43_v13, %s235_s8  ;;  %52 = vrot.lane.b32.xlu0 %v43_v13, %s236_s9  ;;  %v51_v15 = vadd.f32 %v50_v14, %v49_v12  ;;  %s84_s10 = sadd.f32 %s83_s7, %s81_s29 }
  0x20   :  { %s87_s12 = smax.f32 %s237_s11, %s84_s10 }
  0x21   :  { %v88_v16 = vstv %s87_s12 }
  0x22   :  { %61 = vrot.lane.b32.xlu1 %v51_v15, %s235_s8  ;;  %55 = vrot.lane.b32.xlu0 %v51_v15, %s236_s9  ;;  %166 = vrcp.f32 %v88_v16 }
  0x26   :  { %67 = vrot.lane.b32.xlu1 %v51_v15, %s238_s13  ;;  %64 = vrot.lane.b32.xlu0 %v43_v13, %s238_s13 }
  0x2c   :  { %v167_v17 = vpop.eup %166 }
  0x2d   :  { %157 = vpush %v167_v17 }
  0x5e   :  { %s290_s14 = spop %157 }
  0x5f   :  { %v91_v35 = vstv %s290_s14 }
  0x90   :  { %v59_v18 = vpop.permute.xlu1 %58  ;;  %v53_v19 = vpop.permute.xlu0 %52 }
  0x91   :  { %v54_v20 = vadd.f32 %v53_v19, %v43_v13 }
  0x93   :  { %v60_v25 = vadd.f32 %v59_v18, %v54_v20 }
  0x94   :  { %v62_v21 = vpop.permute.xlu1 %61  ;;  %v56_v22 = vpop.permute.xlu0 %55 }
  0x95   :  { %v57_v23 = vadd.f32 %v56_v22, %v51_v15 }
  0x97   :  { %v63_v24 = vadd.f32 %v62_v21, %v57_v23 }
  0x98   :  { %v68_v27 = vpop.permute.xlu1 %67  ;;  %v65_v28 = vpop.permute.xlu0 %64 }
  0x99   :  { %v69_v29 = vadd.f32 %v68_v27, %v63_v24  ;;  %v66_v30 = vadd.f32 %v65_v28, %v60_v25 }
  0x9b   :  { %v79_v33 = vmul.f32 %v75_v26, %v69_v29  ;;  %v76_v34 = vmul.f32 %v75_v26, %v66_v30 }
  0x9d   :  { %v77_v36 = vadd.f32 %v76_v34, %v74_v31  ;;  %v80_v37 = vadd.f32 %v79_v33, %v78_v32 }
  0x9f   :  { %v92_v38 = vmul.f32 %v91_v35, %v77_v36  ;;  %85 = vst [vmem:[#allocation5] sm:$0x1] %v77_v36  ;;  %86 = vst [vmem:[#allocation6] sm:$0x1] %v80_v37 }
  0xa0   :  { %195 = shalt.err (!%p192_p10)
}
  0xa1   :  { %s196_s25 = scalar_lea.hbm %s340_s5, 16 }
  0xa2   :  { %p197_p11 = scmp.ne.s32.totalorder %s340_s5, %s196_s25  ;;  %p200_p12 = scmp.lt.u32.totalorder %s196_s25, %s340_s5 }
  0xa4   :  { %p202_p13 = pnand %p200_p12, %p197_p11 }
  0xa6   :  { %205 = shalt.err (!%p202_p13)
}
  0xa7   :  { %133 = dma.vmem_to_hbm [thread:$0]  %s131_s20, 16, %s340_s5, [#allocation3]   ;;  %v93_v39 = vmul.f32 %v91_v35, %v80_v37  ;;  %v94_v40 = vmul.f32 %v92_v38, %v92_v38 }
  0xa8   :  { %s206_s30 = scalar_lea.vmem %s299_s22, 16  ;;  %s210_s7 = scalar_lea.vmem %s299_s22, 32 }
  0xa9   :  { %p207_p0 = scmp.ne.s32.totalorder %s299_s22, %s206_s30  ;;  %p211_p1 = scmp.lt.s32.totalorder %s299_s22, %s299_s22 }
  0xaa   :  { %p212_p2 = scmp.lt.s32.totalorder %s210_s7, %s206_s30 }
  0xac   :  { %p213_p3 = por %p212_p2, %p211_p1 }
  0xae   :  { %p214_p4 = pnand %p213_p3, %p207_p0 }
  0xb0   :  { %217 = shalt.err (!%p214_p4)
}
  0xb1   :  { %s218_s10 = scalar_lea.hbm %s341_s6, 16 }
  0xb2   :  { %p219_p5 = scmp.ne.s32.totalorder %s341_s6, %s218_s10  ;;  %p222_p6 = scmp.lt.u32.totalorder %s218_s10, %s341_s6 }
  0xb4   :  { %p224_p7 = pnand %p222_p6, %p219_p5 }
  0xb6   :  { %227 = shalt.err (!%p224_p7)
}
  0xb7   :  { %143 = dma.vmem_to_hbm [thread:$0]  %s299_s22, 16, %s341_s6, [#allocation7]   ;;  %v95_v41 = vsub.f32 %v93_v39, %v94_v40  ;;  %v108_v46 = vlaneseq }
  0xb9   :  { %v96_v42 = vmax.f32 %v95_v41, 0.0  ;;  %v109_v50 = vshrl.u32 %v108_v46, 7 }
  0xbb   :  { %168 = vrsqrt.f32 %v96_v42  ;;  %vm99_vm1 = vcmp.eq.f32.partialorder %v96_v42, inf  ;;  %v102_v45 = vand.u32 2147483648, %v96_v42  ;;  %vm101_vm2 = vcmp.eq.f32.partialorder %v96_v42, 0.0 }
  0xbc   :  { %v110_v51 = vsub.s32 0, %v109_v50 }
  0xbe   :  { %v111_v52 = vrot.slane %v92_v38, %v110_v51 }
  0xc0   :  { %v113_v54 = vsub.f32 %v282_v0, %v111_v52 }
  0xc5   :  { %v169_v43 = vpop.eup %168 }
  0xc6   :  { %v98_v44 = vmul.f32 %v169_v43, %v96_v42 }
  0xc8   :  { %v100_v47 = vsel %vm99_vm1, %v96_v42, %v98_v44 }
  0xc9   :  { %v103_v48 = vsel %vm101_vm2, %v102_v45, %v100_v47 }
  0xca   :  { %v104_v49 = vmax.f32 %v103_v48, 1e-08 }
  0xcc   :  { %170 = vrcp.f32 %v104_v49 }
  0xd6   :  { %v171_v53 = vpop.eup %170 }
  0xd7   :  { %v118_v55 = vrot.slane %v171_v53, %v110_v51 }
  0xd9   :  { %v120_v56 = vmul.f32 %v118_v55, %v113_v54 }
  0xdb   :  { %121 = vst [vmem:[%s339_s4] sm:$0x3] %v120_v56 }
  0xdc   :  { %230 = dma.done.wait [#allocation3], 16  }
  0xdd   :  { %231 = vsyncadd [#allocation3], 4294967280 }
  0xde   :  { %232 = dma.done.wait [#allocation7], 16  }
  0xdf   :  { %233 = vsyncadd [#allocation7], 4294967280 }
  0xe0   :  { %152 = vsyncpa [#allocation3], 1 }
  0xe1   :  { %153 = vsyncpa [#allocation7], 1 }
  0xe2   :  { %154 = vsyncpa [#allocation4], 1 }

</bundles_post_ra>
